<compile_context>
chip_gen: v5e
topology: v5e:2x2
jax: 0.10.0
libtpu: 0.0.40
codegen_flags: <defaults>
</compile_context>

<pallas_src>
import functools
import math

import jax
import jax.numpy as jnp
from jax.experimental import pallas as pl
from jax.experimental.pallas import tpu as pltpu


def _round_up(x, m):
    return ((x + m - 1) // m) * m


def _supports_single_buffer():
    """One-time feature probe for pl.Buffered / BlockSpec(pipeline_mode=...)."""
    if not hasattr(pl, "Buffered"):
        return False
    try:
        pl.BlockSpec((8, 128), lambda i: (0, 0), pipeline_mode=pl.Buffered(1))
    except TypeError:
        return False
    return True


_SINGLE_BUFFER_OK = _supports_single_buffer()


def _device_vmem_budget():
    """~80% of per-TensorCore VMEM (device-aware; conservative 64 MiB fallback)."""
    cap = None
    try:
        cap = getattr(pltpu.get_tpu_info(), "vmem_capacity_bytes", None)
    except Exception:
        cap = None
    if not cap:
        cap = 64 * 1024 * 1024          # conservative: v7x per-TC capacity
    return max(16 * 1024 * 1024, int(cap * 0.8))


def _ffn_kernel(x_ref, w1_ref, b1_ref, w2_ref, b2_ref, *rest, add_identity,
                separate_identity, compute_dtype, single_step):
    # x_ref:  (tm, d_model)   input dtype
    # w1_ref: (d_model, tf)   compute_dtype   (W1^T slice)
    # b1_ref: (1, tf)         f32
    # w2_ref: (tf, d_model)   compute_dtype   (W2^T slice)
    # b2_ref: (1, d_model)    f32
    # rest:   ([ident_ref], o_ref, [acc_ref])
    idx = 0
    ident_ref = None
    if separate_identity:
        ident_ref = rest[idx]
        idx += 1
    o_ref = rest[idx]
    idx += 1
    acc_ref = None if single_step else rest[idx]

    x = x_ref[...]
    xc = x.astype(compute_dtype)

    # linear1 (+bias) + ReLU on this dim_ff slice. f32 MXU accumulation; bias/ReLU in
    # f32 (portable to v5e which has no bf16 VALU/EUP).
    h = jnp.dot(xc, w1_ref[...], preferred_element_type=jnp.float32)
    h = jnp.maximum(h + b1_ref[...], 0.0)

    # Partial linear2 contribution of this dim_ff slice (f32 accumulation).
    part = jnp.dot(h.astype(compute_dtype), w2_ref[...],
                   preferred_element_type=jnp.float32)

    def finalize(total):
        out = total + b2_ref[...]
        # ffn_dropout = 0.0 in the reference config -> dropout1/dropout2 are identity.
        if add_identity:
            ident = ident_ref[...] if separate_identity else x
            out = out + ident.astype(jnp.float32)
        o_ref[...] = out.astype(o_ref.dtype)

    if single_step:
        finalize(part)
    else:
        k = pl.program_id(1)

        @pl.when(k == 0)
        def _():
            acc_ref[...] = jnp.zeros_like(acc_ref)

        acc_ref[...] += part

        @pl.when(k == pl.num_programs(1) - 1)
        def _():
            finalize(acc_ref[...])


def prepare_ffn_params(w1, b1, w2, b2, compute_dtype=jnp.bfloat16):
    """Transpose + cast PyTorch-layout FFN weights ONCE (hoisted out of forward).
       w1: (dim_ff, d_model), b1: (dim_ff,), w2: (d_model, dim_ff), b2: (d_model,)."""
    dim_ff, d_model = w1.shape
    assert w2.shape == (d_model, dim_ff)
    return {
        "w1_t": jnp.asarray(w1, jnp.float32).T.astype(compute_dtype),  # (d_model, dim_ff)
        "b1": jnp.asarray(b1, jnp.float32).reshape(1, dim_ff),
        "w2_t": jnp.asarray(w2, jnp.float32).T.astype(compute_dtype),  # (dim_ff, d_model)
        "b2": jnp.asarray(b2, jnp.float32).reshape(1, d_model),
        "compute_dtype": compute_dtype,
    }


def _vmem_estimate(tm, tf, d_model, dim_ff, x_bytes, out_bytes, c_bytes,
                   separate_identity):
    """Conservative per-TC VMEM footprint (assumes double-buffered weight blocks)."""
    nk = max(1, dim_ff // tf)
    weights = 2 * (2 * d_model * tf * c_bytes + tf * 4 + d_model * 4)
    acts = 2 * tm * d_model * x_bytes                       # x tile (double-buffered)
    if separate_identity:
        acts += 2 * tm * d_model * x_bytes
    outs = 2 * tm * d_model * out_bytes                     # output tile
    acc = 0 if nk == 1 else tm * d_model * 4                # f32 accumulator scratch
    # Kernel-materialized temporaries: compute-dtype x copy, f32 h, compute-dtype h,
    # f32 partial-product tile.
    temps = tm * d_model * c_bytes + tm * tf * (4 + c_bytes) + tm * d_model * 4
    margin = 2 * 1024 * 1024                                # Mosaic internal scratch
    return weights + acts + outs + acc + temps + margin


def _row_tile_candidates(tm, M):
    tm0 = min(_round_up(max(tm, 8), 8), _round_up(M, 8))
    floor = min(256, tm0)                 # keep the MXU fed: never shrink below 256
    cands = [tm0]
    t = tm0
    while t > floor:
        t = max(floor, _round_up(t // 2, 8))
        if t != cands[-1]:
            cands.append(t)
    return cands


def _ff_tile_candidates(dim_ff, max_ff_tile=None):
    cands = []
    t = dim_ff
    if max_ff_tile is None or t <= max_ff_tile:
        cands.append(t)
    while t % 2 == 0 and (t // 2) % 128 == 0:     # lane dim must stay a 128 multiple
        t //= 2
        if max_ff_tile is not None and t > max_ff_tile:
            continue
        cands.append(t)
        if t == 128:
            break
    if not cands:
        cands = [dim_ff]
    return cands


def ffn_forward(x, params, identity=None, add_identity=True,
                tm=512, max_ff_tile=None, vmem_budget_bytes=None):
    """x: (B, S, d_model) or (M, d_model).  params: output of prepare_ffn_params."""
    orig_shape = x.shape
    d_model = x.shape[-1]
    x2 = x.reshape(-1, d_model)
    M = x2.shape[0]

    w1_t, b1, w2_t, b2 = params["w1_t"], params["b1"], params["w2_t"], params["b2"]
    compute_dtype = params["compute_dtype"]
    d_model_w, dim_ff = w1_t.shape
    assert d_model_w == d_model

    separate_identity = bool(add_identity and identity is not None)
    if separate_identity:
        assert identity.shape == x.shape

    budget = vmem_budget_bytes if vmem_budget_bytes is not None else _device_vmem_budget()

    x_bytes = jnp.dtype(x.dtype).itemsize
    out_bytes = x_bytes
    c_bytes = jnp.dtype(compute_dtype).itemsize

    # ---- Tile selection: prefer shrinking the dim_ff tile before the row tile. ----
    tm_cands = _row_tile_candidates(tm, M)
    tf_cands = _ff_tile_candidates(dim_ff, max_ff_tile)
    picked = None
    for tm_try in tm_cands:
        for tf_try in tf_cands:
            if _vmem_estimate(tm_try, tf_try, d_model, dim_ff, x_bytes, out_bytes,
                              c_bytes, separate_identity) <= budget:
                picked = (tm_try, tf_try)
                break
        if picked is not None:
            break
    if picked is None:                      # best effort: smallest tiles
        picked = (tm_cands[-1], tf_cands[-1])
    tm_eff, tf = picked
    nk = max(1, dim_ff // tf)
    single_step = nk == 1

    operands = [x2, w1_t, b1, w2_t, b2]
    if separate_identity:
        operands.append(identity.reshape(-1, d_model))

    kernel = functools.partial(_ffn_kernel,
                               add_identity=add_identity,
                               separate_identity=separate_identity,
                               compute_dtype=compute_dtype,
                               single_step=single_step)

    def _run(use_single_buffer):
        def _spec(shape, index_map, invariant=False):
            if invariant and use_single_buffer:
                return pl.BlockSpec(shape, index_map, pipeline_mode=pl.Buffered(1))
            return pl.BlockSpec(shape, index_map)

        in_specs = [
            pl.BlockSpec((tm_eff, d_model), lambda i, k: (i, 0)),               # x
            _spec((d_model, tf), lambda i, k: (0, k), invariant=single_step),   # W1^T
            _spec((1, tf), lambda i, k: (0, k), invariant=single_step),         # b1
            _spec((tf, d_model), lambda i, k: (k, 0), invariant=single_step),   # W2^T
            _spec((1, d_model), lambda i, k: (0, 0), invariant=True),           # b2
        ]
        if separate_identity:
            in_specs.append(pl.BlockSpec((tm_eff, d_model), lambda i, k: (i, 0)))

        scratch = [] if single_step else [pltpu.VMEM((tm_eff, d_model), jnp.float32)]

        return pl.pallas_call(
            kernel,
            out_shape=jax.ShapeDtypeStruct((M, d_model), x.dtype),
            grid_spec=pltpu.PrefetchScalarGridSpec(
                num_scalar_prefetch=0,
                grid=(pl.cdiv(M, tm_eff), nk),      # ragged last row block: masked writes
                in_specs=in_specs,
                out_specs=pl.BlockSpec((tm_eff, d_model), lambda i, k: (i, 0)),
                scratch_shapes=scratch,
            ),
            compiler_params=pltpu.CompilerParams(
                # M axis shards across TensorCores on v7x; budget above is per-TC.
                dimension_semantics=("parallel", "arbitrary"),
                vmem_limit_bytes=int(budget),
            ),
        )(*operands)

    if _SINGLE_BUFFER_OK:
        try:
            out = _run(True)
        except (NotImplementedError, pltpu.LoweringException):
            # pipeline_mode=pl.Buffered(1) rejected by this Mosaic version: retry with
            # default double-buffering (only costs extra resident VMEM for invariants).
            out = _run(False)
    else:
        out = _run(False)

    return out.reshape(orig_shape)


def xavier_uniform(key, fan_out, fan_in, dtype=jnp.float32):
    bound = math.sqrt(6.0 / (fan_in + fan_out))
    return jax.random.uniform(key, (fan_out, fan_in), dtype=dtype,
                              minval=-bound, maxval=bound)


if __name__ == "__main__":
    # Small, MXU-aligned config consistent with the module (d_model -> dim_ff -> d_model).
    d_model, dim_ff = 128, 256
    B, S = 2, 16

    key = jax.random.PRNGKey(0)
    kx, k1, k2, ki = jax.random.split(key, 4)

    x = jax.random.normal(kx, (B, S, d_model), dtype=jnp.float32)

    # Deterministic parameter init matching _reset_parameters:
    # xavier_uniform_ for weights, zeros for biases.
    w1 = xavier_uniform(k1, dim_ff, d_model)     # linear1.weight: (dim_ff, d_model)
    b1 = jnp.zeros((dim_ff,), jnp.float32)
    w2 = xavier_uniform(k2, d_model, dim_ff)     # linear2.weight: (d_model, dim_ff)
    b2 = jnp.zeros((d_model,), jnp.float32)

    # Pure-JAX reference (linear1 -> relu -> linear2; dropout p=0.0 is identity).
    ref_core = jnp.maximum(x @ w1.T + b1, 0.0) @ w2.T + b2

    # Weight transpose + cast hoisted: prepared once per compute dtype, reused.
    params_bf16 = prepare_ffn_params(w1, b1, w2, b2, compute_dtype=jnp.bfloat16)
    params_f32 = prepare_ffn_params(w1, b1, w2, b2, compute_dtype=jnp.float32)

    # 1) Default bf16 MXU path, residual reuses the x tile (no second stream).
    out = jax.block_until_ready(ffn_forward(x, params_bf16))
    assert out.shape == (B, S, d_model)
    assert jnp.allclose(out, x + ref_core, atol=5e-2, rtol=5e-2), "bf16 path mismatch"

    # 2) Full-f32 compute path, tight tolerance.
    out_f32 = jax.block_until_ready(ffn_forward(x, params_f32))
    assert jnp.allclose(out_f32, x + ref_core, atol=1e-4, rtol=1e-4), "f32 path mismatch"

    # 3) Explicit identity tensor (separate residual stream).
    ident = jax.random.normal(ki, (B, S, d_model), dtype=jnp.float32)
    out_id = jax.block_until_ready(ffn_forward(x, params_f32, identity=ident))
    assert jnp.allclose(out_id, ident + ref_core, atol=1e-4, rtol=1e-4), "identity mismatch"

    # 4) add_identity=False: no residual operand is streamed at all.
    out_no = jax.block_until_ready(ffn_forward(x, params_f32, add_identity=False))
    assert jnp.allclose(out_no, ref_core, atol=1e-4, rtol=1e-4), "no-identity mismatch"

    # 5) Force the dim_ff-tiled accumulator path (tf=128 -> 2 reduction steps).
    out_ff = jax.block_until_ready(ffn_forward(x, params_f32, max_ff_tile=128))
    assert jnp.allclose(out_ff, x + ref_core, atol=1e-4, rtol=1e-4), "ff-tiled mismatch"

    # 6) Ragged last row block (M=32, tm=24): exercises masked edge writes, no padding.
    out_rag = jax.block_until_ready(ffn_forward(x, params_f32, tm=24))
    assert jnp.allclose(out_rag, x + ref_core, atol=1e-4, rtol=1e-4), "ragged mismatch"

    # TODO(synk): ffn_dropout > 0 (training-mode RNG dropout) is not implemented;
    # the reference config uses p=0.0, which is the identity.
    print("KERNEL_OK")
</pallas_src>

<mosaic_0001>
module attributes {stable_mosaic.version = 11 : i64} {
  func.func @_ffn_kernel(%arg0: i32, %arg1: i32, %arg2: memref<32x128xf32, #tpu.memory_space<vmem>>, %arg3: memref<128x256xbf16, #tpu.memory_space<vmem>>, %arg4: memref<1x256xf32, #tpu.memory_space<vmem>>, %arg5: memref<256x128xbf16, #tpu.memory_space<vmem>>, %arg6: memref<1x128xf32, #tpu.memory_space<vmem>>, %arg7: memref<32x128xf32, #tpu.memory_space<vmem>>) attributes {dimension_semantics = [#tpu.dimension_semantics<parallel>, #tpu.dimension_semantics<arbitrary>], iteration_bounds = array<i64: 1, 1>, scalar_prefetch = 0 : i64, scratch_operands = 0 : i64, tpu.core_type = #tpu.core_type<tc>, window_params = [{transform_indices = @transform_0, window_bounds = array<i64: 32, 128>}, {pipeline_mode = #tpu.pipeline_mode<synchronous>, transform_indices = @transform_1, window_bounds = array<i64: 128, 256>}, {pipeline_mode = #tpu.pipeline_mode<synchronous>, transform_indices = @transform_2, window_bounds = array<i64: 1, 256>}, {pipeline_mode = #tpu.pipeline_mode<synchronous>, transform_indices = @transform_3, window_bounds = array<i64: 256, 128>}, {pipeline_mode = #tpu.pipeline_mode<synchronous>, transform_indices = @transform_4, window_bounds = array<i64: 1, 128>}, {transform_indices = @transform_5, window_bounds = array<i64: 32, 128>}]} {
    %c0 = arith.constant 0 : index
    %c0_0 = arith.constant 0 : index
    %0 = vector.load %arg2[%c0, %c0_0] : memref<32x128xf32, #tpu.memory_space<vmem>>, vector<32x128xf32>
    %1 = arith.truncf %0 : vector<32x128xf32> to vector<32x128xbf16>
    %c0_1 = arith.constant 0 : index
    %c0_2 = arith.constant 0 : index
    %2 = vector.load %arg3[%c0_1, %c0_2] : memref<128x256xbf16, #tpu.memory_space<vmem>>, vector<128x256xbf16>
    %cst = arith.constant dense<0.000000e+00> : vector<32x256xf32>
    %3 = tpu.matmul %1, %2, %cst {dimension_numbers = #tpu.dot_dimension_numbers<[1], [0], [0], [1], [0, 0, 1, 1], [], []>} : vector<32x128xbf16>, vector<128x256xbf16>, vector<32x256xf32> -> vector<32x256xf32>
    %c0_3 = arith.constant 0 : index
    %c0_4 = arith.constant 0 : index
    %4 = vector.load %arg4[%c0_3, %c0_4] : memref<1x256xf32, #tpu.memory_space<vmem>>, vector<1x256xf32>
    %5 = vector.broadcast %4 : vector<1x256xf32> to vector<32x256xf32>
    %6 = arith.addf %3, %5 : vector<32x256xf32>
    %cst_5 = arith.constant 0.000000e+00 : f32
    %7 = vector.broadcast %cst_5 : f32 to vector<32x256xf32>
    %8 = arith.maximumf %6, %7 : vector<32x256xf32>
    %9 = arith.truncf %8 : vector<32x256xf32> to vector<32x256xbf16>
    %c0_6 = arith.constant 0 : index
    %c0_7 = arith.constant 0 : index
    %10 = vector.load %arg5[%c0_6, %c0_7] : memref<256x128xbf16, #tpu.memory_space<vmem>>, vector<256x128xbf16>
    %cst_8 = arith.constant dense<0.000000e+00> : vector<32x128xf32>
    %11 = tpu.matmul %9, %10, %cst_8 {dimension_numbers = #tpu.dot_dimension_numbers<[1], [0], [0], [1], [0, 0, 1, 1], [], []>} : vector<32x256xbf16>, vector<256x128xbf16>, vector<32x128xf32> -> vector<32x128xf32>
    %c0_9 = arith.constant 0 : index
    %c0_10 = arith.constant 0 : index
    %12 = vector.load %arg6[%c0_9, %c0_10] : memref<1x128xf32, #tpu.memory_space<vmem>>, vector<1x128xf32>
    %13 = vector.broadcast %12 : vector<1x128xf32> to vector<32x128xf32>
    %14 = arith.addf %11, %13 : vector<32x128xf32>
    %15 = arith.addf %14, %0 : vector<32x128xf32>
    %c0_11 = arith.constant 0 : index
    %c0_12 = arith.constant 0 : index
    %16 = vector.load %arg7[%c0_11, %c0_12] : memref<32x128xf32, #tpu.memory_space<vmem>>, vector<32x128xf32>
    tpu.vector_store %arg7[%c0_11, %c0_12], %15 {strides = array<i32>} : memref<32x128xf32, #tpu.memory_space<vmem>>, vector<32x128xf32>,
    return
  }
  func.func @transform_0(%arg0: i32, %arg1: i32) -> (i32, i32) {
    %c0_i32 = arith.constant 0 : i32
    %c0_i32_0 = arith.constant 0 : i32
    return %arg0, %c0_i32 : i32, i32
  }
  func.func @transform_1(%arg0: i32, %arg1: i32) -> (i32, i32) {
    %c0_i32 = arith.constant 0 : i32
    %c0_i32_0 = arith.constant 0 : i32
    return %c0_i32, %arg1 : i32, i32
  }
  func.func @transform_2(%arg0: i32, %arg1: i32) -> (i32, i32) {
    %c0_i32 = arith.constant 0 : i32
    %c0_i32_0 = arith.constant 0 : i32
    return %c0_i32, %arg1 : i32, i32
  }
  func.func @transform_3(%arg0: i32, %arg1: i32) -> (i32, i32) {
    %c0_i32 = arith.constant 0 : i32
    %c0_i32_0 = arith.constant 0 : i32
    return %arg1, %c0_i32 : i32, i32
  }
  func.func @transform_4(%arg0: i32, %arg1: i32) -> (i32, i32) {
    %c0_i32 = arith.constant 0 : i32
    %c0_i32_0 = arith.constant 0 : i32
    %c0_i32_1 = arith.constant 0 : i32
    return %c0_i32, %c0_i32_0 : i32, i32
  }
  func.func @transform_5(%arg0: i32, %arg1: i32) -> (i32, i32) {
    %c0_i32 = arith.constant 0 : i32
    %c0_i32_0 = arith.constant 0 : i32
    return %arg0, %c0_i32 : i32, i32
  }
}

</mosaic_0001>

<bundles_post_ra>
// kernel: tpu_custom_call.1
= control target key start
LH: loop header
LB: loop body
LE: loop exit
PB: predicated region body
PF: predicated region fallthrough
CT: control target
= control target key end

     0   :  { %10 = vsyncpa [#allocation3], 0  ;;  %s819_s0 = inlined_call_operand.hbm [shape: f32[32,128], index: 0, kind: input, shape index: {}]   ;;  %s820_s1 = inlined_call_operand.hbm [shape: bf16[128,256], index: 1, kind: input, shape index: {}]   ;;  %s821_s2 = inlined_call_operand.hbm [shape: f32[1,256], index: 2, kind: input, shape index: {}]   ;;  %s822_s3 = inlined_call_operand.hbm [shape: bf16[256,128], index: 3, kind: input, shape index: {}]   ;;  %s823_s4 = inlined_call_operand.vmem [shape: f32[1,128], index: 4, kind: input, shape index: {}]   ;;  %s824_s5 = inlined_call_operand.hbm [shape: f32[32,128], index: 5, kind: output, shape index: {}]  }
   0x1   :  { %11 = vsyncpa [#allocation6], 0 }
   0x2   :  { %12 = vsyncpa [#allocation9], 0 }
   0x3   :  { %13 = vsyncpa [#allocation4], 0  ;;  %s31_s20 = sshll.u32 %s820_s1, 4  ;;  %s737_s21 = smov [#allocation5]   ;;  %s32_s20 = int_to_ptr.hbm [resolvable:$true] %s31_s20 }
   0x4   :  { %s33_s22 = sshll.u32 %s737_s21, 4  ;;  %s18_s25 = sshll.u32 %s819_s0, 4  ;;  %s34_s22 = int_to_ptr.vmem [resolvable:$true] %s33_s22  ;;  %s19_s25 = int_to_ptr.hbm [resolvable:$true] %s18_s25 }
   0x5   :  { %s738_s26 = smov 128   ;;  %s739_s27 = smov 8  }
   0x6   :  { %39 = dma.hbm_to_vmem [thread:$0]  %s32_s20, 2048, %s34_s22, [#allocation6], %s738_s26, %s738_s26, %s739_s27  }
   0x7   :  { %s740_s28 = smov [#allocation2]   ;;  %s45_s1 = sshll.u32 %s821_s2, 4  ;;  %s46_s1 = int_to_ptr.hbm [resolvable:$true] %s45_s1 }
   0x8   :  { %s20_s29 = sshll.u32 %s740_s28, 4  ;;  %s55_s8 = sshll.u32 %s822_s3, 4  ;;  %s21_s29 = int_to_ptr.vmem [resolvable:$true] %s20_s29  ;;  %s56_s8 = int_to_ptr.hbm [resolvable:$true] %s55_s8 }
   0x9   :  { %26 = dma.hbm_to_vmem [thread:$0]  %s19_s25, 512, %s21_s29, [#allocation3], %s738_s26, %s738_s26, %s739_s27  }
   0xa   :  { %s741_s9 = smov [#allocation7]   ;;  %s742_s11 = smov [#allocation8]  }
   0xb   :  { %s47_s10 = sshll.u32 %s741_s9, 4  ;;  %s57_s12 = sshll.u32 %s742_s11, 4  ;;  %s48_s10 = int_to_ptr.vmem [resolvable:$true] %s47_s10  ;;  %s58_s12 = int_to_ptr.vmem [resolvable:$true] %s57_s12 }
   0xc   :  { %50 = dma.hbm_to_vmem [thread:$0]  %s46_s1, 32, %s48_s10, [#allocation6]  }
   0xd   :  { %s743_s13 = smov 64   ;;  %s744_s2 = smov 4  }
   0xe   :  { %63 = dma.hbm_to_vmem [thread:$0]  %s56_s8, 2048, %s58_s12, [#allocation9], %s743_s13, %s743_s13, %s744_s2  }
   0xf   :  { %729 = dma.done.wait [#allocation3], 512  }
  0x10   :  { %730 = vsyncadd [#allocation3], 4294966784 }
  0x11   :  { %731 = dma.done.wait [#allocation6], 2080  }
  0x12   :  { %732 = vsyncadd [#allocation6], 4294965216 }
  0x13   :  { %733 = dma.done.wait [#allocation9], 2048  }
  0x14   :  { %734 = vsyncadd [#allocation9], 4294965248  ;;  %v497_v0 = vld [vmem:[#allocation5 + $0x70] sm:$0xf]  ;;  %v582_v1 = vld [vmem:[#allocation5 + $0x74] sm:$0xf0] }
  0x15   :  { %v581_v2 = vld [vmem:[#allocation5 + $0x74] sm:$0xf]  ;;  %v498_v3 = vor.u32 %v582_v1, %v497_v0  ;;  %v499_v4 = vld [vmem:[#allocation5 + $0x78] sm:$0xf0]  ;;  %v489_v5 = vld [vmem:[#allocation5 + $0x60] sm:$0xf] }
  0x16   :  { %v580_v6 = vld [vmem:[#allocation5 + $0x64] sm:$0xf0]  ;;  %v502_v7 = vor.u32 %v581_v2, %v499_v4  ;;  %v579_v8 = vld [vmem:[#allocation5 + $0x64] sm:$0xf]  ;;  %v491_v9 = vld [vmem:[#allocation5 + $0x68] sm:$0xf0] }
  0x17   :  { %190 = vmatpush.bf16.msra.mxu0 %v498_v3  ;;  %v490_v10 = vor.u32 %v580_v6, %v489_v5  ;;  %v494_v11 = vor.u32 %v579_v8, %v491_v9  ;;  %v481_v12 = vld [vmem:[#allocation5 + $0x50] sm:$0xf]  ;;  %v578_v13 = vld [vmem:[#allocation5 + $0x54] sm:$0xf0]  ;;  %v577_v14 = vld [vmem:[#allocation5 + $0x54] sm:$0xf] }
  0x18   :  { %209 = vmatpush.bf16.msra.mxu1 %v502_v7  ;;  %v483_v15 = vld [vmem:[#allocation5 + $0x58] sm:$0xf0]  ;;  %v482_v16 = vor.u32 %v578_v13, %v481_v12  ;;  %v473_v18 = vld [vmem:[#allocation5 + $0x40] sm:$0xf]  ;;  %v576_v19 = vld [vmem:[#allocation5 + $0x44] sm:$0xf0] }
  0x19   :  { %v486_v17 = vor.u32 %v577_v14, %v483_v15  ;;  %v575_v20 = vld [vmem:[#allocation5 + $0x44] sm:$0xf]  ;;  %v475_v21 = vld [vmem:[#allocation5 + $0x48] sm:$0xf0]  ;;  %v474_v22 = vor.u32 %v576_v19, %v473_v18  ;;  %v465_v24 = vld [vmem:[#allocation5 + $0x30] sm:$0xf] }
  0x1a   :  { %v478_v23 = vor.u32 %v575_v20, %v475_v21  ;;  %v574_v25 = vld [vmem:[#allocation5 + $0x34] sm:$0xf0]  ;;  %v573_v26 = vld [vmem:[#allocation5 + $0x34] sm:$0xf]  ;;  %v467_v27 = vld [vmem:[#allocation5 + $0x38] sm:$0xf0] }
  0x1b   :  { %191 = vmatpush.bf16.msra.mxu0 %v490_v10  ;;  %v466_v28 = vor.u32 %v574_v25, %v465_v24  ;;  %v470_v29 = vor.u32 %v573_v26, %v467_v27  ;;  %v457_v30 = vld [vmem:[#allocation5 + $0x20] sm:$0xf]  ;;  %v572_v31 = vld [vmem:[#allocation5 + $0x24] sm:$0xf0]  ;;  %v571_v32 = vld [vmem:[#allocation5 + $0x24] sm:$0xf] }
  0x1c   :  { %210 = vmatpush.bf16.msra.mxu1 %v494_v11  ;;  %v459_v33 = vld [vmem:[#allocation5 + $0x28] sm:$0xf0]  ;;  %v458_v34 = vor.u32 %v572_v31, %v457_v30  ;;  %v590_v35 = vld [vmem:[#allocation8 + $0x38] sm:$0xff]  ;;  %v449_v38 = vld [vmem:[#allocation5 + $0x10] sm:$0xf]  ;;  %s424_s18 = sshll.u32 %s824_s5, 4  ;;  %s425_s18 = int_to_ptr.hbm [resolvable:$true] %s424_s18 }
  0x1d   :  { %v598_v36 = vld [vmem:[#allocation8 + $0x78] sm:$0xff]  ;;  %v462_v37 = vor.u32 %v571_v32, %v459_v33  ;;  %v569_v40 = vld [vmem:[#allocation5 + $0x14] sm:$0xf]  ;;  %372 = vmatpush.bf16.msra.mxu2 %v590_v35  ;;  %v568_v47 = vld [vmem:[#allocation5 + $0x4] sm:$0xf0] }
  0x1e   :  { %v570_v39 = vld [vmem:[#allocation5 + $0x14] sm:$0xf0]  ;;  %v451_v41 = vld [vmem:[#allocation5 + $0x18] sm:$0xf0]  ;;  %391 = vmatpush.bf16.msra.mxu3 %v598_v36  ;;  %v441_v46 = vld [vmem:[#allocation5] sm:$0xf] }
  0x1f   :  { %192 = vmatpush.bf16.msra.mxu0 %v482_v16  ;;  %v589_v42 = vld [vmem:[#allocation8 + $0x30] sm:$0xff]  ;;  %v450_v44 = vor.u32 %v570_v39, %v449_v38  ;;  %v454_v45 = vor.u32 %v569_v40, %v451_v41  ;;  %v567_v48 = vld [vmem:[#allocation5 + $0x4] sm:$0xf]  ;;  %v443_v49 = vld [vmem:[#allocation5 + $0x8] sm:$0xf0]  ;;  %v442_v52 = vor.u32 %v568_v47, %v441_v46 }
  0x20   :  { %211 = vmatpush.bf16.msra.mxu1 %v486_v17  ;;  %v597_v43 = vld [vmem:[#allocation8 + $0x70] sm:$0xff]  ;;  %v588_v50 = vld [vmem:[#allocation8 + $0x28] sm:$0xff]  ;;  %v794_v53 = vld [vmem:[#allocation2] sm:$0xff]  ;;  %v446_v55 = vor.u32 %v567_v48, %v443_v49 }
  0x21   :  { %373 = vmatpush.bf16.msra.mxu2 %v589_v42  ;;  %v596_v51 = vld [vmem:[#allocation8 + $0x68] sm:$0xff]  ;;  %v587_v56 = vld [vmem:[#allocation8 + $0x20] sm:$0xff]  ;;  %v802_v60 = vld [vmem:[#allocation2 + $0x18] sm:$0xff] }
  0x22   :  { %392 = vmatpush.bf16.msra.mxu3 %v597_v43  ;;  %v796_v54 = vld [vmem:[#allocation2 + $0x8] sm:$0xff]  ;;  %v800_v59 = vld [vmem:[#allocation2 + $0x10] sm:$0xff]  ;;  %v586_v62 = vld [vmem:[#allocation8 + $0x18] sm:$0xff] }
  0x23   :  { %193 = vmatpush.bf16.msra.mxu0 %v474_v22  ;;  %v595_v57 = vld [vmem:[#allocation8 + $0x60] sm:$0xff]  ;;  %v86_v58 = vpack.c.bf16 %v796_v54, %v794_v53  ;;  %v87_v61 = vpack.c.bf16 %v802_v60, %v800_v59  ;;  %v594_v63 = vld [vmem:[#allocation8 + $0x58] sm:$0xff]  ;;  %v585_v0 = vld [vmem:[#allocation8 + $0x10] sm:$0xff] }
  0x24   :  { %212 = vmatpush.bf16.msra.mxu1 %v478_v23  ;;  %v593_v1 = vld [vmem:[#allocation8 + $0x50] sm:$0xff]  ;;  %v584_v2 = vld [vmem:[#allocation8 + $0x8] sm:$0xff]  ;;  %v583_v4 = vld [vmem:[#allocation8] sm:$0xff] }
  0x25   :  { %374 = vmatpush.bf16.msra.mxu2 %v588_v50  ;;  %v592_v3 = vld [vmem:[#allocation8 + $0x48] sm:$0xff]  ;;  %v591_v5 = vld [vmem:[#allocation8 + $0x40] sm:$0xff]  ;;  %v104_v6 = vld [vmem:[#allocation7] sm:$0x3] }
  0x26   :  { %393 = vmatpush.bf16.msra.mxu3 %v596_v51  ;;  %v106_v9 = vperm.slane %v104_v6, 0  ;;  %v107_v10 = vperm.slane %v104_v6, 1 }
  0x27   :  { %194 = vmatpush.bf16.msra.mxu0 %v466_v28 }
  0x28   :  { %213 = vmatpush.bf16.msra.mxu1 %v470_v29 }
  0x29   :  { %375 = vmatpush.bf16.msra.mxu2 %v587_v56 }
  0x2a   :  { %394 = vmatpush.bf16.msra.mxu3 %v595_v57 }
  0x2b   :  { %195 = vmatpush.bf16.msra.mxu0 %v458_v34 }
  0x2c   :  { %214 = vmatpush.bf16.msra.mxu1 %v462_v37  ;;  %v608_v37 = vld [vmem:[%s823_s4] ss:$0 sm:$0xff]  ;;  %s745_s4 = smov [#allocation10]  }
  0x2d   :  { %376 = vmatpush.bf16.msra.mxu2 %v586_v62  ;;  %s422_s15 = sshll.u32 %s745_s4, 4  ;;  %s423_s15 = int_to_ptr.vmem [resolvable:$true] %s422_s15 }
  0x2e   :  { %395 = vmatpush.bf16.msra.mxu3 %v594_v63 }
  0x2f   :  { %196 = vmatpush.bf16.msra.mxu0 %v450_v44 }
  0x30   :  { %215 = vmatpush.bf16.msra.mxu1 %v454_v45 }
  0x31   :  { %377 = vmatpush.bf16.msra.mxu2 %v585_v0 }
  0x32   :  { %396 = vmatpush.bf16.msra.mxu3 %v593_v1 }
  0x33   :  { %197 = vmatpush.bf16.msra.mxu0 %v442_v52 }
  0x34   :  { %216 = vmatpush.bf16.msra.mxu1 %v446_v55 }
  0x35   :  { %378 = vmatpush.bf16.msra.mxu2 %v584_v2 }
  0x36   :  { %198 = vmatmul.bf16.vlgmr.msra.gmra.mxu0 %v86_v58  ;;  %397 = vmatpush.bf16.msra.mxu3 %v592_v3 }
  0x37   :  { %217 = vmatmul.bf16.vlgmr.msra.gmra.mxu1 %v86_v58 }
  0x39   :  { %379 = vmatpush.bf16.msra.mxu2 %v583_v4 }
  0x3a   :  { %398 = vmatpush.bf16.msra.mxu3 %v591_v5 }
  0x46   :  { %203 = vmatmul.bf16.gmra.mxu0 %v87_v61 }
  0x47   :  { %222 = vmatmul.bf16.gmra.mxu1 %v87_v61 }
  0xb3   :  { %v199_v7 = vpop.f32.mrf.mxu0 }
  0xb4   :  { %v218_v8 = vpop.f32.mrf.mxu1  ;;  %v200_v11 = vadd.f32 %v199_v7, %v106_v9 }
  0xb5   :  { %v219_v12 = vadd.f32 %v218_v8, %v107_v10 }
  0xb6   :  { %v228_v17 = vmax.f32 %v200_v11, 0.0 }
  0xb7   :  { %v229_v19 = vmax.f32 %v219_v12, 0.0 }
  0xbb   :  { %v201_v13 = vpop.f32.mrf.mxu0 }
  0xbc   :  { %v202_v14 = vadd.f32 %v201_v13, %v106_v9  ;;  %v220_v15 = vpop.f32.mrf.mxu1 }
  0xbd   :  { %v221_v16 = vadd.f32 %v220_v15, %v107_v10 }
  0xbe   :  { %v230_v18 = vmax.f32 %v202_v14, 0.0 }
  0xbf   :  { %v231_v20 = vmax.f32 %v221_v16, 0.0 }
  0xc0   :  { %v236_v21 = vpack.c.bf16 %v230_v18, %v228_v17 }
  0xc1   :  { %v237_v22 = vpack.c.bf16 %v231_v20, %v229_v19 }
  0xc2   :  { %380 = vmatmul.bf16.vlgmr.msra.gmra.mxu2 %v236_v21 }
  0xc3   :  { %399 = vmatmul.bf16.vlgmr.msra.gmra.mxu3 %v237_v22  ;;  %v204_v23 = vpop.f32.mrf.mxu0 }
  0xc4   :  { %v223_v24 = vpop.f32.mrf.mxu1  ;;  %v205_v25 = vadd.f32 %v204_v23, %v106_v9 }
  0xc5   :  { %v224_v26 = vadd.f32 %v223_v24, %v107_v10 }
  0xc6   :  { %v232_v31 = vmax.f32 %v205_v25, 0.0 }
  0xc7   :  { %v233_v33 = vmax.f32 %v224_v26, 0.0 }
  0xcb   :  { %v206_v27 = vpop.f32.mrf.mxu0 }
  0xcc   :  { %v207_v28 = vadd.f32 %v206_v27, %v106_v9  ;;  %v225_v29 = vpop.f32.mrf.mxu1 }
  0xcd   :  { %v226_v30 = vadd.f32 %v225_v29, %v107_v10 }
  0xce   :  { %v234_v32 = vmax.f32 %v207_v28, 0.0 }
  0xcf   :  { %v235_v34 = vmax.f32 %v226_v30, 0.0 }
  0xd0   :  { %v238_v35 = vpack.c.bf16 %v234_v32, %v232_v31 }
  0xd1   :  { %v239_v36 = vpack.c.bf16 %v235_v34, %v233_v33 }
  0xd2   :  { %385 = vmatmul.bf16.gmra.mxu2 %v238_v35 }
  0xd3   :  { %404 = vmatmul.bf16.gmra.mxu3 %v239_v36 }
 0x145   :  { %v381_v38 = vpop.f32.mrf.mxu2 }
 0x146   :  { %v382_v39 = vadd.f32 %v608_v37, %v381_v38  ;;  %v400_v40 = vpop.f32.mrf.mxu3 }
 0x148   :  { %v401_v41 = vadd.f32 %v400_v40, %v382_v39 }
 0x14a   :  { %v410_v42 = vadd.f32 %v401_v41, %v794_v53 }
 0x14c   :  { %414 = vst [vmem:[#allocation10] sm:$0xff] %v410_v42 }
 0x14d   :  { %v383_v43 = vpop.f32.mrf.mxu2 }
 0x14e   :  { %v384_v44 = vadd.f32 %v608_v37, %v383_v43  ;;  %v402_v45 = vpop.f32.mrf.mxu3 }
 0x150   :  { %v403_v46 = vadd.f32 %v402_v45, %v384_v44 }
 0x152   :  { %v411_v47 = vadd.f32 %v403_v46, %v796_v54 }
 0x154   :  { %415 = vst [vmem:[#allocation10 + $0x8] sm:$0xff] %v411_v47 }
 0x155   :  { %v386_v48 = vpop.f32.mrf.mxu2 }
 0x156   :  { %v387_v49 = vadd.f32 %v608_v37, %v386_v48  ;;  %v405_v50 = vpop.f32.mrf.mxu3 }
 0x158   :  { %v406_v51 = vadd.f32 %v405_v50, %v387_v49 }
 0x15a   :  { %v412_v52 = vadd.f32 %v406_v51, %v800_v59 }
 0x15c   :  { %416 = vst [vmem:[#allocation10 + $0x10] sm:$0xff] %v412_v52 }
 0x15d   :  { %v388_v55 = vpop.f32.mrf.mxu2 }
 0x15e   :  { %v389_v56 = vadd.f32 %v608_v37, %v388_v55  ;;  %v407_v57 = vpop.f32.mrf.mxu3 }
 0x160   :  { %v408_v53 = vadd.f32 %v407_v57, %v389_v56 }
 0x162   :  { %v413_v54 = vadd.f32 %v408_v53, %v802_v60 }
 0x164   :  { %417 = vst [vmem:[#allocation10 + $0x18] sm:$0xff] %v413_v54 }
 0x165   :  { %430 = dma.vmem_to_hbm [thread:$0]  %s423_s15, 512, %s425_s18, [#allocation4], %s738_s26, %s738_s26, %s739_s27  }
 0x166   :  { %735 = dma.done.wait [#allocation4], 512  }
 0x167   :  { %736 = vsyncadd [#allocation4], 4294966784 }
 0x168   :  { %435 = vsyncpa [#allocation3], 1 }
 0x169   :  { %436 = vsyncpa [#allocation6], 1 }
 0x16a   :  { %437 = vsyncpa [#allocation9], 1 }
 0x16b   :  { %438 = vsyncpa [#allocation4], 1 }

</bundles_post_ra>
